<compile_context>
chip_gen: v6e
topology: v6e:2x2x1
jax: 0.10.0
libtpu: 0.0.40
codegen_flags: <defaults>
</compile_context>

<pallas_src>
import jax
import jax.numpy as jnp
from jax.experimental import pallas as pl
from jax.experimental.pallas import tpu as pltpu

LANES = 128
SUBLANES = 8
MAX_BLOCK_BYTES = 4 * 1024 * 1024     # per input, per pipeline buffer
VMEM_LIMIT_BYTES = 48 * 1024 * 1024   # 2 inputs x 2 buffers x 4 MiB << 48 MiB


def _detect_num_tensorcores():
    """Best-effort TensorCore-per-device count (1 on v5e/v6e, 2 on v7x)."""
    candidates = []
    try:
        candidates.append(pltpu.get_tpu_info())
    except Exception:
        pass
    try:
        candidates.append(jax.devices()[0])
    except Exception:
        pass
    for obj in candidates:
        for name in ("num_cores", "core_count", "num_tensorcores",
                     "tensorcores_per_chip", "cores_per_chip"):
            v = getattr(obj, name, None)
            if isinstance(v, int) and 1 <= v <= 16:
                return v
    try:
        kind = jax.devices()[0].device_kind.lower()
        if "v7" in kind or "7x" in kind:
            return 2
    except Exception:
        pass
    return 1


def _make_kernel(rows_all, block_rows, steps_per_shard, sharded, ragged):
    def kernel(a_ref, b_ref, out_ref):
        if sharded:
            step = pl.program_id(1)
            blk = pl.program_id(0) * steps_per_shard + step
        else:
            step = pl.program_id(0)
            blk = step

        # Zero this shard's VMEM-resident output block on its first step.
        @pl.when(step == 0)
        def _():
            out_ref[...] = jnp.zeros_like(out_ref)

        diff = jnp.abs(b_ref[...].astype(jnp.float32) -
                       a_ref[...].astype(jnp.float32))

        if ragged:
            # Mask rows that fall past the true row count (partial last block
            # and any fully-out-of-range shard-overshoot blocks).
            row_ids = blk * block_rows + jax.lax.broadcasted_iota(
                jnp.int32, (block_rows, LANES), 0)
            diff = jnp.where(row_ids < rows_all, diff, 0.0)

        # Reduce only over the leading axis: (block_rows, 128) viewed as
        # (block_rows//8, 8, 128) f32 vregs summed vreg-wise (VALU only, no
        # XLU cross-lane reduce on the loop-carried path).
        out_ref[...] += jnp.sum(
            diff.reshape(block_rows // SUBLANES, SUBLANES, LANES),
            axis=0, keepdims=True)

    return kernel


def grad_loss(grad_fake, grad_real):
    """Pallas equivalent of GradLoss.forward: sum(mean(abs(grad_real - grad_fake)))."""
    assert grad_fake.shape == grad_real.shape
    n_elems = grad_fake.size

    itemsize_f = jnp.dtype(grad_fake.dtype).itemsize
    itemsize_r = jnp.dtype(grad_real.dtype).itemsize
    min_item = max(1, min(itemsize_f, itemsize_r))
    max_item = max(1, max(itemsize_f, itemsize_r))
    # Sublane packing multiple: 8 for f32, 16 for bf16, 32 for int8/fp8.
    sublane_mult = max(SUBLANES, (SUBLANES * 4) // min_item)

    rows_all = n_elems // LANES
    rem = n_elems - rows_all * LANES

    flat_f = jnp.ravel(grad_fake)
    flat_r = jnp.ravel(grad_real)

    if rows_all < sublane_mult or rem != 0:
        # Tiny input, or element count not a multiple of 128 lanes.  Carving a
        # lane-aligned bulk out of the flat array would materialize a near-full
        # HBM copy of both inputs, so let XLA do one fused reduction instead.
        # TODO(synk): cover non-multiple-of-128 sizes with a 1-D-block /
        # manual-DMA Pallas path instead of the XLA fallback.
        diff = flat_r.astype(jnp.float32) - flat_f.astype(jnp.float32)
        return (jnp.sum(jnp.abs(diff)) / jnp.float32(n_elems)).astype(jnp.float32)

    max_block_rows = (MAX_BLOCK_BYTES // (LANES * max_item))
    max_block_rows = max(sublane_mult,
                         (max_block_rows // sublane_mult) * sublane_mult)
    block_rows = min(max_block_rows, (rows_all // sublane_mult) * sublane_mult)

    total_blocks = (rows_all + block_rows - 1) // block_rows
    last_block = total_blocks - 1

    num_cores = _detect_num_tensorcores()
    num_shards = num_cores if (num_cores > 1 and total_blocks >= num_cores) else 1
    steps = (total_blocks + num_shards - 1) // num_shards
    covered_rows = num_shards * steps * block_rows
    ragged = covered_rows != rows_all

    # Free reshapes of contiguous flat arrays (no slicing, no copies).
    a2d = flat_f.reshape(rows_all, LANES)
    b2d = flat_r.reshape(rows_all, LANES)

    if num_shards == 1:
        sharded = False
        grid = (steps,)
        in_map = lambda i: (i, 0)
        out_map = lambda i: (0, 0, 0)
        dims = ("arbitrary",)
    else:
        sharded = True
        grid = (num_shards, steps)
        if num_shards * steps > total_blocks:
            # Clamp overshoot blocks onto the last real block; their rows are
            # fully masked in-kernel, so they contribute exactly zero.
            in_map = lambda s, i: (jnp.minimum(s * steps + i, last_block), 0)
        else:
            in_map = lambda s, i: (s * steps + i, 0)
        out_map = lambda s, i: (s, 0, 0)
        dims = (getattr(pltpu, "CORE_PARALLEL", "parallel"),
                getattr(pltpu, "ARBITRARY", "arbitrary"))

    cost = pl.CostEstimate(
        flops=3 * rows_all * LANES,
        transcendentals=0,
        bytes_accessed=rows_all * LANES * (itemsize_f + itemsize_r),
    )

    kernel = _make_kernel(rows_all, block_rows, steps, sharded, ragged)

    partials = pl.pallas_call(
        kernel,
        out_shape=jax.ShapeDtypeStruct((num_shards, SUBLANES, LANES),
                                       jnp.float32),
        grid_spec=pltpu.PrefetchScalarGridSpec(
            num_scalar_prefetch=0,
            grid=grid,
            in_specs=[
                pl.BlockSpec((block_rows, LANES), in_map),
                pl.BlockSpec((block_rows, LANES), in_map),
            ],
            out_specs=pl.BlockSpec((1, SUBLANES, LANES), out_map),
        ),
        compiler_params=pltpu.CompilerParams(
            dimension_semantics=dims,
            vmem_limit_bytes=VMEM_LIMIT_BYTES,
        ),
        cost_estimate=cost,
    )(a2d, b2d)

    total = jnp.sum(partials)
    # Mean over all elements; torch.sum of the resulting 0-d tensor is identity.
    return (total / jnp.float32(n_elems)).astype(jnp.float32)


if __name__ == "__main__":
    key = jax.random.PRNGKey(0)

    def _ref(gf, gr):
        return jnp.sum(jnp.mean(jnp.abs(gr.astype(jnp.float32) -
                                        gf.astype(jnp.float32))))

    cases = [
        ((2, 4, 16, 16), jnp.float32),   # lane-aligned, single block
        ((3, 5, 16, 16), jnp.float32),   # rows % block_rows != 0 -> masked last block
        ((4, 4, 16, 16), jnp.bfloat16),  # bf16 gradients (16-row sublane packing)
    ]
    for shape, dtype in cases:
        key, k1, k2 = jax.random.split(key, 3)
        gf = jax.random.normal(k1, shape, dtype=jnp.float32).astype(dtype)
        gr = jax.random.normal(k2, shape, dtype=jnp.float32).astype(dtype)
        out = jax.block_until_ready(grad_loss(gf, gr))
        ref = _ref(gf, gr)
        assert jnp.allclose(out, ref, rtol=1e-5, atol=1e-6), (shape, dtype, out, ref)

    print("KERNEL_OK")
</pallas_src>

<mosaic_0001>
module attributes {stable_mosaic.version = 11 : i64} {
  func.func @kernel(%arg0: i32, %arg1: memref<16x128xf32, #tpu.memory_space<vmem>>, %arg2: memref<16x128xf32, #tpu.memory_space<vmem>>, %arg3: memref<1x8x128xf32, #tpu.memory_space<vmem>>) attributes {dimension_semantics = [#tpu.dimension_semantics<arbitrary>], iteration_bounds = array<i64: 1>, scalar_prefetch = 0 : i64, scratch_operands = 0 : i64, tpu.core_type = #tpu.core_type<tc>, window_params = [{transform_indices = @transform_0, window_bounds = array<i64: 16, 128>}, {transform_indices = @transform_1, window_bounds = array<i64: 16, 128>}, {pipeline_mode = #tpu.pipeline_mode<synchronous>, transform_indices = @transform_2, window_bounds = array<i64: 1, 8, 128>}]} {
    %c0_i32 = arith.constant 0 : i32
    %0 = arith.cmpi eq, %arg0, %c0_i32 : i32
    %1 = arith.extui %0 : i1 to i32
    %c0_i32_0 = arith.constant 0 : i32
    %2 = arith.cmpi ne, %1, %c0_i32_0 : i32
    scf.if %2 {
      %cst_10 = arith.constant 0.000000e+00 : f32
      %13 = vector.broadcast %cst_10 : f32 to vector<1x8x128xf32>
      %c0_11 = arith.constant 0 : index
      %c0_12 = arith.constant 0 : index
      %c0_13 = arith.constant 0 : index
      %14 = vector.load %arg3[%c0_11, %c0_12, %c0_13] : memref<1x8x128xf32, #tpu.memory_space<vmem>>, vector<1x8x128xf32>
      tpu.vector_store %arg3[%c0_11, %c0_12, %c0_13], %13 {strides = array<i32>} : memref<1x8x128xf32, #tpu.memory_space<vmem>>, vector<1x8x128xf32>,
    } else {
    }
    %c0 = arith.constant 0 : index
    %c0_1 = arith.constant 0 : index
    %3 = vector.load %arg2[%c0, %c0_1] : memref<16x128xf32, #tpu.memory_space<vmem>>, vector<16x128xf32>
    %c0_2 = arith.constant 0 : index
    %c0_3 = arith.constant 0 : index
    %4 = vector.load %arg1[%c0_2, %c0_3] : memref<16x128xf32, #tpu.memory_space<vmem>>, vector<16x128xf32>
    %5 = arith.subf %3, %4 : vector<16x128xf32>
    %6 = math.absf %5 : vector<16x128xf32>
    %c0_4 = arith.constant 0 : index
    %c0_5 = arith.constant 0 : index
    %c0_6 = arith.constant 0 : index
    %7 = vector.load %arg3[%c0_4, %c0_5, %c0_6] : memref<1x8x128xf32, #tpu.memory_space<vmem>>, vector<1x8x128xf32>
    %8 = vector.shape_cast %6 : vector<16x128xf32> to vector<2x8x128xf32>
    %cst = arith.constant dense<0.000000e+00> : vector<8x128xf32>
    %9 = vector.multi_reduction <add>, %8, %cst [0] : vector<2x8x128xf32> to vector<8x128xf32>
    %10 = vector.shape_cast %9 : vector<8x128xf32> to vector<1x8x128xf32>
    %11 = arith.addf %7, %10 : vector<1x8x128xf32>
    %c0_7 = arith.constant 0 : index
    %c0_8 = arith.constant 0 : index
    %c0_9 = arith.constant 0 : index
    %12 = vector.load %arg3[%c0_7, %c0_8, %c0_9] : memref<1x8x128xf32, #tpu.memory_space<vmem>>, vector<1x8x128xf32>
    tpu.vector_store %arg3[%c0_7, %c0_8, %c0_9], %11 {strides = array<i32>} : memref<1x8x128xf32, #tpu.memory_space<vmem>>, vector<1x8x128xf32>,
    return
  }
  func.func @transform_0(%arg0: i32) -> (i32, i32) {
    %c0_i32 = arith.constant 0 : i32
    %c0_i32_0 = arith.constant 0 : i32
    return %arg0, %c0_i32 : i32, i32
  }
  func.func @transform_1(%arg0: i32) -> (i32, i32) {
    %c0_i32 = arith.constant 0 : i32
    %c0_i32_0 = arith.constant 0 : i32
    return %arg0, %c0_i32 : i32, i32
  }
  func.func @transform_2(%arg0: i32) -> (i32, i32, i32) {
    %c0_i32 = arith.constant 0 : i32
    %c0_i32_0 = arith.constant 0 : i32
    %c0_i32_1 = arith.constant 0 : i32
    %c0_i32_2 = arith.constant 0 : i32
    return %c0_i32, %c0_i32_0, %c0_i32_1 : i32, i32, i32
  }
}

</mosaic_0001>

<bundles_post_ra>
// kernel: tpu_custom_call.1
= control target key start
LH: loop header
LB: loop body
LE: loop exit
PB: predicated region body
PF: predicated region fallthrough
CT: control target
= control target key end

     0   :  { %7 = vsyncpa [#allocation3], 0  ;;  %s174_s0 = inlined_call_operand.hbm [shape: f32[16,128], index: 0, kind: input, shape index: {}]   ;;  %s175_s1 = inlined_call_operand.hbm [shape: f32[16,128], index: 1, kind: input, shape index: {}]   ;;  %s176_s2 = inlined_call_operand.hbm [shape: f32[1,8,128], index: 2, kind: output, shape index: {}]  }
   0x1   :  { %8 = vsyncpa [#allocation6], 0 }
   0x2   :  { %9 = vsyncpa [#allocation4], 0  ;;  %s145_s9 = smov [#allocation2]  }
   0x3   :  { %s15_s10 = sshll.u32 %s145_s9, 4  ;;  %s16_s10 = int_to_ptr.vmem [resolvable:$true] %s15_s10 }
   0x4   :  { %s87_s11 = scalar_lea.vmem %s16_s10, 256  ;;  %p92_p1 = scmp.lt.s32.totalorder %s16_s10, %s16_s10 }
   0x5   :  { %p88_p0 = scmp.ne.s32.totalorder %s16_s10, %s87_s11  ;;  %p93_p2 = scmp.lt.s32.totalorder %s87_s11, %s87_s11 }
   0x7   :  { %p94_p3 = por %p93_p2, %p92_p1 }
   0x9   :  { %p95_p4 = pnand %p94_p3, %p88_p0 }
   0xb   :  { %98 = shalt.err (!%p95_p4)
}
   0xc   :  { %s146_s12 = smov 128   ;;  %s147_s13 = smov 8  }
   0xd   :  { %21 = dma.hbm_to_vmem [thread:$0]  %s174_s0, 256, %s16_s10, [#allocation3], %s146_s12, %s146_s12, %s147_s13  }
   0xe   :  { %s148_s16 = smov [#allocation5]  }
   0xf   :  { %s27_s17 = sshll.u32 %s148_s16, 4  ;;  %s28_s17 = int_to_ptr.vmem [resolvable:$true] %s27_s17 }
  0x10   :  { %s107_s18 = scalar_lea.vmem %s28_s17, 256  ;;  %p112_p6 = scmp.lt.s32.totalorder %s28_s17, %s28_s17 }
  0x11   :  { %p108_p5 = scmp.ne.s32.totalorder %s28_s17, %s107_s18  ;;  %p113_p7 = scmp.lt.s32.totalorder %s107_s18, %s107_s18 }
  0x13   :  { %p114_p8 = por %p113_p7, %p112_p6 }
  0x15   :  { %p115_p9 = pnand %p114_p8, %p108_p5 }
  0x17   :  { %118 = shalt.err (!%p115_p9)
}
  0x18   :  { %33 = dma.hbm_to_vmem [thread:$0]  %s175_s1, 256, %s28_s17, [#allocation6], %s146_s12, %s146_s12, %s147_s13  }
  0x19   :  { %139 = dma.done.wait [#allocation3], 256  }
  0x1a   :  { %140 = vsyncadd [#allocation3], 4294967040 }
  0x1b   :  { %141 = dma.done.wait [#allocation6], 256  }
  0x1c   :  { %142 = vsyncadd [#allocation6], 4294967040  ;;  %v45_v0 = vld [vmem:[#allocation5] sm:$0xff]  ;;  %v46_v1 = vld [vmem:[#allocation5 + $0x8] sm:$0xff]  ;;  %s149_s0 = smov [#allocation7]  }
  0x1d   :  { %v47_v2 = vld [vmem:[#allocation2] sm:$0xff]  ;;  %v48_v3 = vld [vmem:[#allocation2 + $0x8] sm:$0xff]  ;;  %s63_s21 = sshll.u32 %s149_s0, 4  ;;  %s64_s21 = int_to_ptr.vmem [resolvable:$true] %s63_s21 }
  0x1e   :  { %v49_v4 = vsub.f32 %v45_v0, %v47_v2  ;;  %v50_v5 = vsub.f32 %v46_v1, %v48_v3  ;;  %s119_s22 = scalar_lea.vmem %s64_s21, 128  ;;  %p124_p11 = scmp.lt.s32.totalorder %s64_s21, %s64_s21 }
  0x1f   :  { %p120_p10 = scmp.ne.s32.totalorder %s64_s21, %s119_s22  ;;  %p125_p12 = scmp.lt.s32.totalorder %s119_s22, %s119_s22 }
  0x20   :  { %v51_v6 = vand.u32 2147483647, %v49_v4  ;;  %v52_v7 = vand.u32 2147483647, %v50_v5 }
  0x21   :  { %p126_p13 = por %p125_p12, %p124_p11 }
  0x22   :  { %v54_v8 = vadd.f32 %v52_v7, %v51_v6 }
  0x23   :  { %p127_p0 = pnand %p126_p13, %p120_p10 }
  0x24   :  { %56 = vst [vmem:[#allocation7] sm:$0xff] %v54_v8 }
  0x25   :  { %130 = shalt.err (!%p127_p0)
}
  0x26   :  { %66 = dma.vmem_to_hbm [thread:$0]  %s64_s21, 128, %s176_s2, [#allocation4]  }
  0x27   :  { %143 = dma.done.wait [#allocation4], 128  }
  0x28   :  { %144 = vsyncadd [#allocation4], 4294967168 }
  0x29   :  { %70 = vsyncpa [#allocation3], 1 }
  0x2a   :  { %71 = vsyncpa [#allocation6], 1 }
  0x2b   :  { %72 = vsyncpa [#allocation4], 1 }

</bundles_post_ra>
